<compile_context>
chip_gen: v5e
topology: v5e:2x2
jax: 0.10.0
libtpu: 0.0.40
codegen_flags: <defaults>
</compile_context>

<pallas_src>
import jax
import jax.numpy as jnp
from jax import lax
from jax.experimental import pallas as pl
from jax.experimental.pallas import tpu as pltpu


def _round_up(x, m):
    return (x + m - 1) // m * m


def _vmem_limit_bytes():
    # Generation-aware VMEM budget: ~112 MiB on v5e/v6e (128 MiB physical),
    # ~56 MiB on v7x (64 MiB physical). Falls back to 64 MiB if the query fails.
    try:
        if hasattr(pltpu, "get_tpu_info"):
            cap = int(getattr(pltpu.get_tpu_info(), "vmem_capacity_bytes", 0) or 0)
            if cap > 0:
                return int(min(cap - cap // 8, 112 * 1024 * 1024))
    except Exception:
        pass
    return 64 * 1024 * 1024


def _resident_spec(block_shape):
    """BlockSpec for a grid-invariant operand: constant index_map, single-buffered."""
    index_map = lambda b, t: tuple(0 for _ in block_shape)
    try:
        return pl.BlockSpec(block_shape, index_map, pipeline_mode=pl.Buffered(1))
    except (TypeError, AttributeError):  # older jax without pipeline_mode / Buffered
        return pl.BlockSpec(block_shape, index_map)


def _weightdrop_rnn_kernel(x_ref,      # VMEM (t_blk, b_blk, I_pad)  matmul_dtype
                           wih_ref,    # VMEM (H_pad, I_pad)         matmul_dtype (pre-cast)
                           whh_ref,    # VMEM (H_pad, H_pad)         matmul_dtype (pre-masked+cast)
                           bias_ref,   # VMEM (1, H_pad)             f32 (b_ih + b_hh)
                           h0_ref,     # VMEM (b_blk, H_pad)         f32
                           out_ref,    # VMEM (t_blk, b_blk, H_pad)  f32
                           h_scr):     # VMEM scratch (b_blk, H_pad) f32 -- carried hidden state
    t_blk, b_blk, i_pad = x_ref.shape
    h_pad = wih_ref.shape[0]
    mxu_dtype = whh_ref.dtype
    t_idx = pl.program_id(1)

    # First time block of a batch chunk: (re)load the initial hidden state.
    @pl.when(t_idx == 0)
    def _():
        h_scr[...] = h0_ref[...].astype(jnp.float32)

    # Input projection for the whole time block on the MXU, bias folded in once.
    # Staged directly into out_ref (f32) and overwritten by the recurrence below.
    x2d = x_ref[...].reshape(t_blk * b_blk, i_pad)
    xp = lax.dot_general(
        x2d, wih_ref[...],
        dimension_numbers=(((1,), (1,)), ((), ())),            # x @ W_ih^T
        preferred_element_type=jnp.float32)
    out_ref[...] = (xp.reshape(t_blk, b_blk, h_pad)
                    + bias_ref[...].astype(jnp.float32)).astype(out_ref.dtype)

    whh_eff = whh_ref[...]   # mask + cast already applied in the wrapper

    def step(t, h):
        # Carried state stays f32; only the MXU operand copy is cast to matmul_dtype.
        rec = lax.dot_general(
            h.astype(mxu_dtype), whh_eff,
            dimension_numbers=(((1,), (1,)), ((), ())),        # h @ W_hh_eff^T
            preferred_element_type=jnp.float32)
        h_new = jnp.tanh(out_ref[t].astype(jnp.float32) + rec)
        out_ref[t] = h_new.astype(out_ref.dtype)
        return h_new

    unroll = t_blk if t_blk <= 8 else 8
    h_final = lax.fori_loop(0, t_blk, step, h_scr[...], unroll=unroll)
    h_scr[...] = h_final                                        # carry across time blocks


def weightdrop_rnn(x, wih, whh_raw, bih, bhh, h0, *, dropout_p, seed,
                   t_blk=32, b_blk=None, matmul_dtype=jnp.bfloat16):
    """WeightDrop-wrapped single-layer tanh RNN forward.

    x: (T, B, I) f32 time-major, h0: (B, H) f32.
    Returns (outputs (T, B, H) f32, final hidden (B, H) f32).
    Note: with matmul_dtype=bfloat16 the carried state is kept in f32 but rounding of
    the per-step MXU operand can drift over very long sequences; pass
    matmul_dtype=jnp.float32 if bit-tight long-horizon accuracy is required.
    """
    T, B, I = x.shape
    H = wih.shape[0]
    f32 = jnp.float32

    # --- WeightDrop mask: Bernoulli keep with prob (1 - p), values {0,1}, NO rescale ---
    if float(dropout_p) > 0.0:
        mask = jax.random.bernoulli(jax.random.PRNGKey(seed), p=1.0 - float(dropout_p),
                                    shape=whh_raw.shape).astype(f32)
    else:
        mask = jnp.ones_like(whh_raw, dtype=f32)

    # --- pad to hardware tiles: last dim -> 128 lanes, second-to-last -> 8 sublanes ---
    B_pad = _round_up(B, 8)
    I_pad = _round_up(I, 128)
    H_pad = _round_up(H, 128)
    t_blk = max(1, min(t_blk, T))
    T_pad = _round_up(T, t_blk)
    if b_blk is None:
        # Split batch into two chunks (v7x megacore) when it costs no extra padding.
        b_blk = B_pad // 2 if (B_pad >= 16 and B_pad % 16 == 0) else B_pad
    else:
        b_blk = _round_up(min(b_blk, B_pad), 8)
    B_pad = _round_up(B_pad, b_blk)

    # --- wrapper-side fusion: mask, pad and dtype casts happen ONCE, outside the kernel ---
    wih_p = (jnp.zeros((H_pad, I_pad), f32).at[:H, :I]
             .set(wih.astype(f32))).astype(matmul_dtype)
    whh_p = (jnp.zeros((H_pad, H_pad), f32).at[:H, :H]
             .set(whh_raw.astype(f32) * mask)).astype(matmul_dtype)      # W_hh_eff, pre-cast
    x_p = (jnp.zeros((T_pad, B_pad, I_pad), f32).at[:T, :B, :I]
           .set(x.astype(f32))).astype(matmul_dtype)                     # streamed in bf16
    bias = jnp.reshape(bih, (1, H)).astype(f32) + jnp.reshape(bhh, (1, H)).astype(f32)
    bias_p = jnp.zeros((1, H_pad), f32).at[:, :H].set(bias)
    h0_p = jnp.zeros((B_pad, H_pad), f32).at[:B, :H].set(h0.astype(f32))

    n_b = B_pad // b_blk
    n_t = T_pad // t_blk

    flops = 2 * T_pad * B_pad * (I_pad * H_pad + H_pad * H_pad)
    bytes_accessed = (x_p.size * x_p.dtype.itemsize
                      + wih_p.size * wih_p.dtype.itemsize
                      + whh_p.size * whh_p.dtype.itemsize
                      + bias_p.size * 4 + h0_p.size * 4
                      + T_pad * B_pad * H_pad * 4)
    cost = pl.CostEstimate(flops=int(flops),
                           transcendentals=int(T_pad * B_pad * H_pad),
                           bytes_accessed=int(bytes_accessed))

    out_p = pl.pallas_call(
        _weightdrop_rnn_kernel,
        out_shape=jax.ShapeDtypeStruct((T_pad, B_pad, H_pad), f32),
        grid=(n_b, n_t),
        in_specs=[
            pl.BlockSpec((t_blk, b_blk, I_pad), lambda b, t: (t, b, 0)),   # x (streamed)
            _resident_spec((H_pad, I_pad)),                                # W_ih (resident)
            _resident_spec((H_pad, H_pad)),                                # W_hh * mask (resident)
            _resident_spec((1, H_pad)),                                    # b_ih + b_hh (resident)
            pl.BlockSpec((b_blk, H_pad), lambda b, t: (b, 0)),             # h0 (per batch chunk)
        ],
        out_specs=pl.BlockSpec((t_blk, b_blk, H_pad), lambda b, t: (t, b, 0)),
        scratch_shapes=[pltpu.VMEM((b_blk, H_pad), f32)],                  # carried hidden state
        compiler_params=pltpu.CompilerParams(
            dimension_semantics=("parallel", "arbitrary"),
            vmem_limit_bytes=_vmem_limit_bytes()),
        cost_estimate=cost,
    )(x_p, wih_p, whh_p, bias_p, h0_p)

    out = out_p[:T, :B, :H]
    hn = out[T - 1]            # h_T == last emitted hidden state
    return out, hn


def _rnn_reference(x, wih, whh, bih, bhh, h0):
    """Pure-JAX single-layer tanh RNN (for correctness checks)."""
    def step(h, xt):
        h_new = jnp.tanh(xt @ wih.T + h @ whh.T + bih + bhh)
        return h_new, h_new
    h_final, ys = lax.scan(step, h0, x)
    return ys, h_final


if __name__ == "__main__":
    # Small shapes consistent with an RNN wrapped by WeightDrop.
    T, B, I, H = 8, 4, 32, 32
    DROPOUT = 0.5

    key = jax.random.PRNGKey(0)
    k_x, k_wih, k_whh, k_bih, k_bhh = jax.random.split(key, 5)
    bound = 1.0 / jnp.sqrt(H)  # PyTorch RNN init range
    x = jax.random.normal(k_x, (T, B, I), dtype=jnp.float32)
    wih = jax.random.uniform(k_wih, (H, I), minval=-bound, maxval=bound, dtype=jnp.float32)
    whh_raw = jax.random.uniform(k_whh, (H, H), minval=-bound, maxval=bound, dtype=jnp.float32)
    bih = jax.random.uniform(k_bih, (H,), minval=-bound, maxval=bound, dtype=jnp.float32)
    bhh = jax.random.uniform(k_bhh, (H,), minval=-bound, maxval=bound, dtype=jnp.float32)
    h0 = jnp.zeros((B, H), dtype=jnp.float32)

    # 1) dropout=0, f32 matmuls: must match the plain tanh-RNN reference.
    out0, hn0 = weightdrop_rnn(x, wih, whh_raw, bih, bhh, h0,
                               dropout_p=0.0, seed=0, matmul_dtype=jnp.float32)
    ref_out, ref_hn = _rnn_reference(x, wih, whh_raw, bih, bhh, h0)
    assert out0.shape == (T, B, H) and hn0.shape == (B, H)
    assert jnp.allclose(out0, ref_out, atol=1e-5, rtol=1e-5)
    assert jnp.allclose(hn0, ref_hn, atol=1e-5, rtol=1e-5)

    # 2) dropout=0.5, f32: must match the reference run with the same DropConnect mask.
    SEED = 1234
    mask = jax.random.bernoulli(jax.random.PRNGKey(SEED), p=1.0 - DROPOUT,
                                shape=whh_raw.shape).astype(jnp.float32)
    out_d, hn_d = weightdrop_rnn(x, wih, whh_raw, bih, bhh, h0,
                                 dropout_p=DROPOUT, seed=SEED, matmul_dtype=jnp.float32)
    ref_out_d, ref_hn_d = _rnn_reference(x, wih, whh_raw * mask, bih, bhh, h0)
    assert jnp.allclose(out_d, ref_out_d, atol=1e-5, rtol=1e-5)
    assert jnp.allclose(hn_d, ref_hn_d, atol=1e-5, rtol=1e-5)

    # 3) default bf16 MXU path (f32 accumulate, f32 carried state): looser tolerance.
    out_b, hn_b = weightdrop_rnn(x, wih, whh_raw, bih, bhh, h0, dropout_p=DROPOUT, seed=SEED)
    assert jnp.allclose(out_b, ref_out_d, atol=5e-2, rtol=5e-2)
    assert jnp.allclose(hn_b, ref_hn_d, atol=5e-2, rtol=5e-2)

    # 4) multi time-block + two batch chunks: exercises hidden-state carry across time
    #    blocks and the batch ("parallel") grid split.
    T2, B2, I2, H2 = 16, 16, 32, 64
    k2 = jax.random.split(jax.random.PRNGKey(7), 6)
    bound2 = 1.0 / jnp.sqrt(H2)
    x2 = jax.random.normal(k2[0], (T2, B2, I2), dtype=jnp.float32)
    wih2 = jax.random.uniform(k2[1], (H2, I2), minval=-bound2, maxval=bound2, dtype=jnp.float32)
    whh2 = jax.random.uniform(k2[2], (H2, H2), minval=-bound2, maxval=bound2, dtype=jnp.float32)
    bih2 = jax.random.uniform(k2[3], (H2,), minval=-bound2, maxval=bound2, dtype=jnp.float32)
    bhh2 = jax.random.uniform(k2[4], (H2,), minval=-bound2, maxval=bound2, dtype=jnp.float32)
    h02 = jax.random.normal(k2[5], (B2, H2), dtype=jnp.float32)
    mask2 = jax.random.bernoulli(jax.random.PRNGKey(SEED), p=1.0 - DROPOUT,
                                 shape=whh2.shape).astype(jnp.float32)
    out2, hn2 = weightdrop_rnn(x2, wih2, whh2, bih2, bhh2, h02, dropout_p=DROPOUT,
                               seed=SEED, t_blk=4, matmul_dtype=jnp.float32)
    ref_out2, ref_hn2 = _rnn_reference(x2, wih2, whh2 * mask2, bih2, bhh2, h02)
    assert jnp.allclose(out2, ref_out2, atol=1e-4, rtol=1e-4)
    assert jnp.allclose(hn2, ref_hn2, atol=1e-4, rtol=1e-4)

    jax.block_until_ready((out0, hn0, out_d, hn_d, out_b, hn_b, out2, hn2))
    print("KERNEL_OK")
</pallas_src>

<mosaic_0001>
module attributes {stable_mosaic.version = 11 : i64} {
  func.func @_weightdrop_rnn_kernel(%arg0: i32, %arg1: i32, %arg2: memref<8x8x128xf32, #tpu.memory_space<vmem>>, %arg3: memref<128x128xf32, #tpu.memory_space<vmem>>, %arg4: memref<128x128xf32, #tpu.memory_space<vmem>>, %arg5: memref<1x128xf32, #tpu.memory_space<vmem>>, %arg6: memref<8x128xf32, #tpu.memory_space<vmem>>, %arg7: memref<8x8x128xf32, #tpu.memory_space<vmem>>, %arg8: memref<8x128xf32, #tpu.memory_space<vmem>>) attributes {dimension_semantics = [#tpu.dimension_semantics<parallel>, #tpu.dimension_semantics<arbitrary>], iteration_bounds = array<i64: 1, 1>, scalar_prefetch = 0 : i64, scratch_operands = 1 : i64, tpu.core_type = #tpu.core_type<tc>, window_params = [{transform_indices = @transform_0, window_bounds = array<i64: 8, 8, 128>}, {pipeline_mode = #tpu.pipeline_mode<synchronous>, transform_indices = @transform_1, window_bounds = array<i64: 128, 128>}, {pipeline_mode = #tpu.pipeline_mode<synchronous>, transform_indices = @transform_2, window_bounds = array<i64: 128, 128>}, {pipeline_mode = #tpu.pipeline_mode<synchronous>, transform_indices = @transform_3, window_bounds = array<i64: 1, 128>}, {transform_indices = @transform_4, window_bounds = array<i64: 8, 128>}, {transform_indices = @transform_5, window_bounds = array<i64: 8, 8, 128>}]} {
    %c0_i32 = arith.constant 0 : i32
    %0 = arith.cmpi eq, %arg1, %c0_i32 : i32
    %1 = arith.extui %0 : i1 to i32
    %c0_i32_0 = arith.constant 0 : i32
    %2 = arith.cmpi ne, %1, %c0_i32_0 : i32
    scf.if %2 {
      %c0_57 = arith.constant 0 : index
      %c0_58 = arith.constant 0 : index
      %96 = vector.load %arg6[%c0_57, %c0_58] : memref<8x128xf32, #tpu.memory_space<vmem>>, vector<8x128xf32>
      %c0_59 = arith.constant 0 : index
      %c0_60 = arith.constant 0 : index
      %97 = vector.load %arg8[%c0_59, %c0_60] : memref<8x128xf32, #tpu.memory_space<vmem>>, vector<8x128xf32>
      tpu.vector_store %arg8[%c0_59, %c0_60], %96 {strides = array<i32>} : memref<8x128xf32, #tpu.memory_space<vmem>>, vector<8x128xf32>,
    } else {
    }
    %c0 = arith.constant 0 : index
    %c0_1 = arith.constant 0 : index
    %c0_2 = arith.constant 0 : index
    %3 = vector.load %arg2[%c0, %c0_1, %c0_2] : memref<8x8x128xf32, #tpu.memory_space<vmem>>, vector<8x8x128xf32>
    %4 = vector.shape_cast %3 : vector<8x8x128xf32> to vector<64x128xf32>
    %c0_3 = arith.constant 0 : index
    %c0_4 = arith.constant 0 : index
    %5 = vector.load %arg3[%c0_3, %c0_4] : memref<128x128xf32, #tpu.memory_space<vmem>>, vector<128x128xf32>
    %cst = arith.constant dense<0.000000e+00> : vector<64x128xf32>
    %6 = tpu.matmul %4, %5, %cst {dimension_numbers = #tpu.dot_dimension_numbers<[1], [1], [0], [0], [0, 0, 1, 0], [], []>} : vector<64x128xf32>, vector<128x128xf32>, vector<64x128xf32> -> vector<64x128xf32>
    %7 = vector.shape_cast %6 : vector<64x128xf32> to vector<8x8x128xf32>
    %c0_5 = arith.constant 0 : index
    %c0_6 = arith.constant 0 : index
    %8 = vector.load %arg5[%c0_5, %c0_6] : memref<1x128xf32, #tpu.memory_space<vmem>>, vector<1x128xf32>
    %9 = vector.shape_cast %8 : vector<1x128xf32> to vector<1x1x128xf32>
    %10 = vector.broadcast %9 : vector<1x1x128xf32> to vector<8x8x128xf32>
    %11 = arith.addf %7, %10 : vector<8x8x128xf32>
    %c0_7 = arith.constant 0 : index
    %c0_8 = arith.constant 0 : index
    %c0_9 = arith.constant 0 : index
    %12 = vector.load %arg7[%c0_7, %c0_8, %c0_9] : memref<8x8x128xf32, #tpu.memory_space<vmem>>, vector<8x8x128xf32>
    tpu.vector_store %arg7[%c0_7, %c0_8, %c0_9], %11 {strides = array<i32>} : memref<8x8x128xf32, #tpu.memory_space<vmem>>, vector<8x8x128xf32>,
    %c0_10 = arith.constant 0 : index
    %c0_11 = arith.constant 0 : index
    %13 = vector.load %arg4[%c0_10, %c0_11] : memref<128x128xf32, #tpu.memory_space<vmem>>, vector<128x128xf32>
    %c0_12 = arith.constant 0 : index
    %c0_13 = arith.constant 0 : index
    %14 = vector.load %arg8[%c0_12, %c0_13] : memref<8x128xf32, #tpu.memory_space<vmem>>, vector<8x128xf32>
    %c0_i32_14 = arith.constant 0 : i32
    %cst_15 = arith.constant dense<0.000000e+00> : vector<8x128xf32>
    %15 = tpu.matmul %14, %13, %cst_15 {dimension_numbers = #tpu.dot_dimension_numbers<[1], [1], [0], [0], [0, 0, 1, 0], [], []>} : vector<8x128xf32>, vector<128x128xf32>, vector<8x128xf32> -> vector<8x128xf32>
    %16 = arith.index_cast %c0_i32_14 : i32 to index
    %c0_16 = arith.constant 0 : index
    %c0_17 = arith.constant 0 : index
    %17 = vector.load %arg7[%16, %c0_16, %c0_17] : memref<8x8x128xf32, #tpu.memory_space<vmem>>, vector<1x8x128xf32>
    %18 = vector.shape_cast %17 : vector<1x8x128xf32> to vector<8x128xf32>
    %19 = arith.addf %18, %15 : vector<8x128xf32>
    %20 = math.tanh %19 : vector<8x128xf32>
    %21 = arith.index_cast %c0_i32_14 : i32 to index
    %c0_18 = arith.constant 0 : index
    %c0_19 = arith.constant 0 : index
    %22 = vector.load %arg7[%21, %c0_18, %c0_19] : memref<8x8x128xf32, #tpu.memory_space<vmem>>, vector<1x8x128xf32>
    %23 = vector.shape_cast %22 : vector<1x8x128xf32> to vector<8x128xf32>
    %24 = vector.shape_cast %20 : vector<8x128xf32> to vector<1x8x128xf32>
    tpu.vector_store %arg7[%21, %c0_18, %c0_19], %24 {strides = array<i32>} : memref<8x8x128xf32, #tpu.memory_space<vmem>>, vector<1x8x128xf32>,
    %c1_i32 = arith.constant 1 : i32
    %cst_20 = arith.constant dense<0.000000e+00> : vector<8x128xf32>
    %25 = tpu.matmul %20, %13, %cst_20 {dimension_numbers = #tpu.dot_dimension_numbers<[1], [1], [0], [0], [0, 0, 1, 0], [], []>} : vector<8x128xf32>, vector<128x128xf32>, vector<8x128xf32> -> vector<8x128xf32>
    %26 = arith.index_cast %c1_i32 : i32 to index
    %c0_21 = arith.constant 0 : index
    %c0_22 = arith.constant 0 : index
    %27 = vector.load %arg7[%26, %c0_21, %c0_22] : memref<8x8x128xf32, #tpu.memory_space<vmem>>, vector<1x8x128xf32>
    %28 = vector.shape_cast %27 : vector<1x8x128xf32> to vector<8x128xf32>
    %29 = arith.addf %28, %25 : vector<8x128xf32>
    %30 = math.tanh %29 : vector<8x128xf32>
    %31 = arith.index_cast %c1_i32 : i32 to index
    %c0_23 = arith.constant 0 : index
    %c0_24 = arith.constant 0 : index
    %32 = vector.load %arg7[%31, %c0_23, %c0_24] : memref<8x8x128xf32, #tpu.memory_space<vmem>>, vector<1x8x128xf32>
    %33 = vector.shape_cast %32 : vector<1x8x128xf32> to vector<8x128xf32>
    %34 = vector.shape_cast %30 : vector<8x128xf32> to vector<1x8x128xf32>
    tpu.vector_store %arg7[%31, %c0_23, %c0_24], %34 {strides = array<i32>} : memref<8x8x128xf32, #tpu.memory_space<vmem>>, vector<1x8x128xf32>,
    %c2_i32 = arith.constant 2 : i32
    %cst_25 = arith.constant dense<0.000000e+00> : vector<8x128xf32>
    %35 = tpu.matmul %30, %13, %cst_25 {dimension_numbers = #tpu.dot_dimension_numbers<[1], [1], [0], [0], [0, 0, 1, 0], [], []>} : vector<8x128xf32>, vector<128x128xf32>, vector<8x128xf32> -> vector<8x128xf32>
    %36 = arith.index_cast %c2_i32 : i32 to index
    %c0_26 = arith.constant 0 : index
    %c0_27 = arith.constant 0 : index
    %37 = vector.load %arg7[%36, %c0_26, %c0_27] : memref<8x8x128xf32, #tpu.memory_space<vmem>>, vector<1x8x128xf32>
    %38 = vector.shape_cast %37 : vector<1x8x128xf32> to vector<8x128xf32>
    %39 = arith.addf %38, %35 : vector<8x128xf32>
    %40 = math.tanh %39 : vector<8x128xf32>
    %41 = arith.index_cast %c2_i32 : i32 to index
    %c0_28 = arith.constant 0 : index
    %c0_29 = arith.constant 0 : index
    %42 = vector.load %arg7[%41, %c0_28, %c0_29] : memref<8x8x128xf32, #tpu.memory_space<vmem>>, vector<1x8x128xf32>
    %43 = vector.shape_cast %42 : vector<1x8x128xf32> to vector<8x128xf32>
    %44 = vector.shape_cast %40 : vector<8x128xf32> to vector<1x8x128xf32>
    tpu.vector_store %arg7[%41, %c0_28, %c0_29], %44 {strides = array<i32>} : memref<8x8x128xf32, #tpu.memory_space<vmem>>, vector<1x8x128xf32>,
    %c3_i32 = arith.constant 3 : i32
    %cst_30 = arith.constant dense<0.000000e+00> : vector<8x128xf32>
    %45 = tpu.matmul %40, %13, %cst_30 {dimension_numbers = #tpu.dot_dimension_numbers<[1], [1], [0], [0], [0, 0, 1, 0], [], []>} : vector<8x128xf32>, vector<128x128xf32>, vector<8x128xf32> -> vector<8x128xf32>
    %46 = arith.index_cast %c3_i32 : i32 to index
    %c0_31 = arith.constant 0 : index
    %c0_32 = arith.constant 0 : index
    %47 = vector.load %arg7[%46, %c0_31, %c0_32] : memref<8x8x128xf32, #tpu.memory_space<vmem>>, vector<1x8x128xf32>
    %48 = vector.shape_cast %47 : vector<1x8x128xf32> to vector<8x128xf32>
    %49 = arith.addf %48, %45 : vector<8x128xf32>
    %50 = math.tanh %49 : vector<8x128xf32>
    %51 = arith.index_cast %c3_i32 : i32 to index
    %c0_33 = arith.constant 0 : index
    %c0_34 = arith.constant 0 : index
    %52 = vector.load %arg7[%51, %c0_33, %c0_34] : memref<8x8x128xf32, #tpu.memory_space<vmem>>, vector<1x8x128xf32>
    %53 = vector.shape_cast %52 : vector<1x8x128xf32> to vector<8x128xf32>
    %54 = vector.shape_cast %50 : vector<8x128xf32> to vector<1x8x128xf32>
    tpu.vector_store %arg7[%51, %c0_33, %c0_34], %54 {strides = array<i32>} : memref<8x8x128xf32, #tpu.memory_space<vmem>>, vector<1x8x128xf32>,
    %c4_i32 = arith.constant 4 : i32
    %cst_35 = arith.constant dense<0.000000e+00> : vector<8x128xf32>
    %55 = tpu.matmul %50, %13, %cst_35 {dimension_numbers = #tpu.dot_dimension_numbers<[1], [1], [0], [0], [0, 0, 1, 0], [], []>} : vector<8x128xf32>, vector<128x128xf32>, vector<8x128xf32> -> vector<8x128xf32>
    %56 = arith.index_cast %c4_i32 : i32 to index
    %c0_36 = arith.constant 0 : index
    %c0_37 = arith.constant 0 : index
    %57 = vector.load %arg7[%56, %c0_36, %c0_37] : memref<8x8x128xf32, #tpu.memory_space<vmem>>, vector<1x8x128xf32>
    %58 = vector.shape_cast %57 : vector<1x8x128xf32> to vector<8x128xf32>
    %59 = arith.addf %58, %55 : vector<8x128xf32>
    %60 = math.tanh %59 : vector<8x128xf32>
    %61 = arith.index_cast %c4_i32 : i32 to index
    %c0_38 = arith.constant 0 : index
    %c0_39 = arith.constant 0 : index
    %62 = vector.load %arg7[%61, %c0_38, %c0_39] : memref<8x8x128xf32, #tpu.memory_space<vmem>>, vector<1x8x128xf32>
    %63 = vector.shape_cast %62 : vector<1x8x128xf32> to vector<8x128xf32>
    %64 = vector.shape_cast %60 : vector<8x128xf32> to vector<1x8x128xf32>
    tpu.vector_store %arg7[%61, %c0_38, %c0_39], %64 {strides = array<i32>} : memref<8x8x128xf32, #tpu.memory_space<vmem>>, vector<1x8x128xf32>,
    %c5_i32 = arith.constant 5 : i32
    %cst_40 = arith.constant dense<0.000000e+00> : vector<8x128xf32>
    %65 = tpu.matmul %60, %13, %cst_40 {dimension_numbers = #tpu.dot_dimension_numbers<[1], [1], [0], [0], [0, 0, 1, 0], [], []>} : vector<8x128xf32>, vector<128x128xf32>, vector<8x128xf32> -> vector<8x128xf32>
    %66 = arith.index_cast %c5_i32 : i32 to index
    %c0_41 = arith.constant 0 : index
    %c0_42 = arith.constant 0 : index
    %67 = vector.load %arg7[%66, %c0_41, %c0_42] : memref<8x8x128xf32, #tpu.memory_space<vmem>>, vector<1x8x128xf32>
    %68 = vector.shape_cast %67 : vector<1x8x128xf32> to vector<8x128xf32>
    %69 = arith.addf %68, %65 : vector<8x128xf32>
    %70 = math.tanh %69 : vector<8x128xf32>
    %71 = arith.index_cast %c5_i32 : i32 to index
    %c0_43 = arith.constant 0 : index
    %c0_44 = arith.constant 0 : index
    %72 = vector.load %arg7[%71, %c0_43, %c0_44] : memref<8x8x128xf32, #tpu.memory_space<vmem>>, vector<1x8x128xf32>
    %73 = vector.shape_cast %72 : vector<1x8x128xf32> to vector<8x128xf32>
    %74 = vector.shape_cast %70 : vector<8x128xf32> to vector<1x8x128xf32>
    tpu.vector_store %arg7[%71, %c0_43, %c0_44], %74 {strides = array<i32>} : memref<8x8x128xf32, #tpu.memory_space<vmem>>, vector<1x8x128xf32>,
    %c6_i32 = arith.constant 6 : i32
    %cst_45 = arith.constant dense<0.000000e+00> : vector<8x128xf32>
    %75 = tpu.matmul %70, %13, %cst_45 {dimension_numbers = #tpu.dot_dimension_numbers<[1], [1], [0], [0], [0, 0, 1, 0], [], []>} : vector<8x128xf32>, vector<128x128xf32>, vector<8x128xf32> -> vector<8x128xf32>
    %76 = arith.index_cast %c6_i32 : i32 to index
    %c0_46 = arith.constant 0 : index
    %c0_47 = arith.constant 0 : index
    %77 = vector.load %arg7[%76, %c0_46, %c0_47] : memref<8x8x128xf32, #tpu.memory_space<vmem>>, vector<1x8x128xf32>
    %78 = vector.shape_cast %77 : vector<1x8x128xf32> to vector<8x128xf32>
    %79 = arith.addf %78, %75 : vector<8x128xf32>
    %80 = math.tanh %79 : vector<8x128xf32>
    %81 = arith.index_cast %c6_i32 : i32 to index
    %c0_48 = arith.constant 0 : index
    %c0_49 = arith.constant 0 : index
    %82 = vector.load %arg7[%81, %c0_48, %c0_49] : memref<8x8x128xf32, #tpu.memory_space<vmem>>, vector<1x8x128xf32>
    %83 = vector.shape_cast %82 : vector<1x8x128xf32> to vector<8x128xf32>
    %84 = vector.shape_cast %80 : vector<8x128xf32> to vector<1x8x128xf32>
    tpu.vector_store %arg7[%81, %c0_48, %c0_49], %84 {strides = array<i32>} : memref<8x8x128xf32, #tpu.memory_space<vmem>>, vector<1x8x128xf32>,
    %c7_i32 = arith.constant 7 : i32
    %cst_50 = arith.constant dense<0.000000e+00> : vector<8x128xf32>
    %85 = tpu.matmul %80, %13, %cst_50 {dimension_numbers = #tpu.dot_dimension_numbers<[1], [1], [0], [0], [0, 0, 1, 0], [], []>} : vector<8x128xf32>, vector<128x128xf32>, vector<8x128xf32> -> vector<8x128xf32>
    %86 = arith.index_cast %c7_i32 : i32 to index
    %c0_51 = arith.constant 0 : index
    %c0_52 = arith.constant 0 : index
    %87 = vector.load %arg7[%86, %c0_51, %c0_52] : memref<8x8x128xf32, #tpu.memory_space<vmem>>, vector<1x8x128xf32>
    %88 = vector.shape_cast %87 : vector<1x8x128xf32> to vector<8x128xf32>
    %89 = arith.addf %88, %85 : vector<8x128xf32>
    %90 = math.tanh %89 : vector<8x128xf32>
    %91 = arith.index_cast %c7_i32 : i32 to index
    %c0_53 = arith.constant 0 : index
    %c0_54 = arith.constant 0 : index
    %92 = vector.load %arg7[%91, %c0_53, %c0_54] : memref<8x8x128xf32, #tpu.memory_space<vmem>>, vector<1x8x128xf32>
    %93 = vector.shape_cast %92 : vector<1x8x128xf32> to vector<8x128xf32>
    %94 = vector.shape_cast %90 : vector<8x128xf32> to vector<1x8x128xf32>
    tpu.vector_store %arg7[%91, %c0_53, %c0_54], %94 {strides = array<i32>} : memref<8x8x128xf32, #tpu.memory_space<vmem>>, vector<1x8x128xf32>,
    %c8_i32 = arith.constant 8 : i32
    %c0_55 = arith.constant 0 : index
    %c0_56 = arith.constant 0 : index
    %95 = vector.load %arg8[%c0_55, %c0_56] : memref<8x128xf32, #tpu.memory_space<vmem>>, vector<8x128xf32>
    tpu.vector_store %arg8[%c0_55, %c0_56], %90 {strides = array<i32>} : memref<8x128xf32, #tpu.memory_space<vmem>>, vector<8x128xf32>,
    return
  }
  func.func @transform_0(%arg0: i32, %arg1: i32) -> (i32, i32, i32) {
    %c0_i32 = arith.constant 0 : i32
    %c0_i32_0 = arith.constant 0 : i32
    return %arg1, %arg0, %c0_i32 : i32, i32, i32
  }
  func.func @transform_1(%arg0: i32, %arg1: i32) -> (i32, i32) {
    %c0_i32 = arith.constant 0 : i32
    %c0_i32_0 = arith.constant 0 : i32
    %c0_i32_1 = arith.constant 0 : i32
    return %c0_i32, %c0_i32_0 : i32, i32
  }
  func.func @transform_2(%arg0: i32, %arg1: i32) -> (i32, i32) {
    %c0_i32 = arith.constant 0 : i32
    %c0_i32_0 = arith.constant 0 : i32
    %c0_i32_1 = arith.constant 0 : i32
    return %c0_i32, %c0_i32_0 : i32, i32
  }
  func.func @transform_3(%arg0: i32, %arg1: i32) -> (i32, i32) {
    %c0_i32 = arith.constant 0 : i32
    %c0_i32_0 = arith.constant 0 : i32
    %c0_i32_1 = arith.constant 0 : i32
    return %c0_i32, %c0_i32_0 : i32, i32
  }
  func.func @transform_4(%arg0: i32, %arg1: i32) -> (i32, i32) {
    %c0_i32 = arith.constant 0 : i32
    %c0_i32_0 = arith.constant 0 : i32
    return %arg0, %c0_i32 : i32, i32
  }
  func.func @transform_5(%arg0: i32, %arg1: i32) -> (i32, i32, i32) {
    %c0_i32 = arith.constant 0 : i32
    %c0_i32_0 = arith.constant 0 : i32
    return %arg1, %arg0, %c0_i32 : i32, i32, i32
  }
}

</mosaic_0001>

<bundles_post_ra>
// kernel: tpu_custom_call.1
= control target key start
LH: loop header
LB: loop body
LE: loop exit
PB: predicated region body
PF: predicated region fallthrough
CT: control target
= control target key end

     0   :  { %10 = vsyncpa [#allocation4], 0  ;;  %s800_s0 = inlined_call_operand.hbm [shape: f32[8,8,128], index: 0, kind: input, shape index: {}]   ;;  %s801_s1 = inlined_call_operand.hbm [shape: f32[128,128], index: 1, kind: input, shape index: {}]   ;;  %s802_s2 = inlined_call_operand.hbm [shape: f32[128,128], index: 2, kind: input, shape index: {}]   ;;  %s803_s3 = inlined_call_operand.vmem [shape: f32[1,128], index: 3, kind: input, shape index: {}]   ;;  %s804_s4 = inlined_call_operand.hbm [shape: f32[8,128], index: 4, kind: input, shape index: {}]   ;;  %s805_s5 = inlined_call_operand.hbm [shape: f32[8,8,128], index: 5, kind: output, shape index: {}]  }
   0x1   :  { %11 = vsyncpa [#allocation7], 0 }
   0x2   :  { %12 = vsyncpa [#allocation10], 0 }
   0x3   :  { %13 = vsyncpa [#allocation5], 0  ;;  %s31_s20 = sshll.u32 %s801_s1, 4  ;;  %s563_s21 = smov [#allocation6]   ;;  %s32_s20 = int_to_ptr.hbm [resolvable:$true] %s31_s20 }
   0x4   :  { %s33_s22 = sshll.u32 %s563_s21, 4  ;;  %s18_s25 = sshll.u32 %s800_s0, 4  ;;  %s34_s22 = int_to_ptr.vmem [resolvable:$true] %s33_s22  ;;  %s19_s25 = int_to_ptr.hbm [resolvable:$true] %s18_s25 }
   0x5   :  { %s564_s26 = smov 128   ;;  %s565_s27 = smov 8  }
   0x6   :  { %39 = dma.hbm_to_vmem [thread:$0]  %s32_s20, 2048, %s34_s22, [#allocation7], %s564_s26, %s564_s26, %s565_s27  }
   0x7   :  { %s566_s28 = smov [#allocation3]   ;;  %s44_s1 = sshll.u32 %s802_s2, 4  ;;  %s45_s1 = int_to_ptr.hbm [resolvable:$true] %s44_s1 }
   0x8   :  { %s20_s29 = sshll.u32 %s566_s28, 4  ;;  %s60_s8 = sshll.u32 %s804_s4, 4  ;;  %s21_s29 = int_to_ptr.vmem [resolvable:$true] %s20_s29  ;;  %s61_s8 = int_to_ptr.hbm [resolvable:$true] %s60_s8 }
   0x9   :  { %26 = dma.hbm_to_vmem [thread:$0]  %s19_s25, 1024, %s21_s29, [#allocation4], %s564_s26, %s564_s26, %s565_s27  }
   0xa   :  { %s567_s9 = smov [#allocation8]   ;;  %s568_s11 = smov [#allocation9]  }
   0xb   :  { %s46_s10 = sshll.u32 %s567_s9, 4  ;;  %s62_s2 = sshll.u32 %s568_s11, 4  ;;  %s47_s10 = int_to_ptr.vmem [resolvable:$true] %s46_s10  ;;  %s63_s2 = int_to_ptr.vmem [resolvable:$true] %s62_s2 }
   0xc   :  { %52 = dma.hbm_to_vmem [thread:$0]  %s45_s1, 2048, %s47_s10, [#allocation7], %s564_s26, %s564_s26, %s565_s27  }
   0xd   :  { %65 = dma.hbm_to_vmem [thread:$0]  %s61_s8, 128, %s63_s2, [#allocation10]  }
   0xe   :  { %555 = dma.done.wait [#allocation4], 1024  }
   0xf   :  { %556 = vsyncadd [#allocation4], 4294966272 }
  0x10   :  { %557 = dma.done.wait [#allocation7], 4096  }
  0x11   :  { %558 = vsyncadd [#allocation7], 4294963200 }
  0x12   :  { %559 = dma.done.wait [#allocation10], 128  }
  0x13   :  { %560 = vsyncadd [#allocation10], 4294967168  ;;  %v111_v0 = vld [vmem:[#allocation6 + $0x78] sm:$0xff]  ;;  %v110_v2 = vld [vmem:[#allocation6 + $0x70] sm:$0xff]  ;;  %s396_s16 = sshll.u32 %s805_s5, 4  ;;  %s397_s16 = int_to_ptr.hbm [resolvable:$true] %s396_s16 }
  0x14   :  { %112 = vmatpush.xpose.msra.mxu0 %v111_v0  ;;  %v621_v1 = vld [vmem:[#allocation8 + $0x78] sm:$0xff]  ;;  %v625_v3 = vld [vmem:[#allocation8 + $0x70] sm:$0xff]  ;;  %v109_v4 = vld [vmem:[#allocation6 + $0x68] sm:$0xff] }
  0x15   :  { %190 = vmatpush.xpose.msra.mxu1 %v621_v1  ;;  %214 = vmatpush.xpose.msra.mxu2 %v621_v1  ;;  %v630_v5 = vld [vmem:[#allocation8 + $0x68] sm:$0xff]  ;;  %v108_v6 = vld [vmem:[#allocation6 + $0x60] sm:$0xff]  ;;  %v107_v8 = vld [vmem:[#allocation6 + $0x58] sm:$0xff] }
  0x16   :  { %239 = vmatpush.xpose.msra.mxu3 %v621_v1  ;;  %v635_v7 = vld [vmem:[#allocation8 + $0x60] sm:$0xff]  ;;  %v640_v9 = vld [vmem:[#allocation8 + $0x58] sm:$0xff]  ;;  %v106_v10 = vld [vmem:[#allocation6 + $0x50] sm:$0xff] }
  0x17   :  { %v645_v11 = vld [vmem:[#allocation8 + $0x50] sm:$0xff]  ;;  %v105_v12 = vld [vmem:[#allocation6 + $0x48] sm:$0xff]  ;;  %v104_v14 = vld [vmem:[#allocation6 + $0x40] sm:$0xff] }
  0x18   :  { %113 = vmatpush.xpose.msra.mxu0 %v110_v2  ;;  %v650_v13 = vld [vmem:[#allocation8 + $0x48] sm:$0xff]  ;;  %v655_v15 = vld [vmem:[#allocation8 + $0x40] sm:$0xff]  ;;  %v103_v16 = vld [vmem:[#allocation6 + $0x38] sm:$0xff] }
  0x19   :  { %191 = vmatpush.xpose.msra.mxu1 %v625_v3  ;;  %215 = vmatpush.xpose.msra.mxu2 %v625_v3  ;;  %v660_v17 = vld [vmem:[#allocation8 + $0x38] sm:$0xff]  ;;  %v102_v18 = vld [vmem:[#allocation6 + $0x30] sm:$0xff]  ;;  %v101_v20 = vld [vmem:[#allocation6 + $0x28] sm:$0xff] }
  0x1a   :  { %240 = vmatpush.xpose.msra.mxu3 %v625_v3  ;;  %v665_v19 = vld [vmem:[#allocation8 + $0x30] sm:$0xff]  ;;  %v670_v21 = vld [vmem:[#allocation8 + $0x28] sm:$0xff]  ;;  %v100_v22 = vld [vmem:[#allocation6 + $0x20] sm:$0xff] }
  0x1b   :  { %v675_v23 = vld [vmem:[#allocation8 + $0x20] sm:$0xff]  ;;  %v99_v24 = vld [vmem:[#allocation6 + $0x18] sm:$0xff]  ;;  %v98_v26 = vld [vmem:[#allocation6 + $0x10] sm:$0xff] }
  0x1c   :  { %114 = vmatpush.xpose.msra.mxu0 %v109_v4  ;;  %v680_v25 = vld [vmem:[#allocation8 + $0x18] sm:$0xff]  ;;  %v685_v27 = vld [vmem:[#allocation8 + $0x10] sm:$0xff]  ;;  %v97_v28 = vld [vmem:[#allocation6 + $0x8] sm:$0xff] }
  0x1d   :  { %192 = vmatpush.xpose.msra.mxu1 %v630_v5  ;;  %216 = vmatpush.xpose.msra.mxu2 %v630_v5  ;;  %v690_v29 = vld [vmem:[#allocation8 + $0x8] sm:$0xff]  ;;  %v96_v30 = vld [vmem:[#allocation6] sm:$0xff]  ;;  %v90_v41 = vld [vmem:[#allocation3 + $0x10] sm:$0xff] }
  0x1e   :  { %241 = vmatpush.xpose.msra.mxu3 %v630_v5  ;;  %v695_v31 = vld [vmem:[#allocation8] sm:$0xff]  ;;  %v89_v34 = vld [vmem:[#allocation3 + $0x8] sm:$0xff]  ;;  %v91_v42 = vld [vmem:[#allocation3 + $0x18] sm:$0xff] }
  0x1f   :  { %v88_v32 = vld [vmem:[#allocation3] sm:$0xff]  ;;  %v93_v47 = vld [vmem:[#allocation3 + $0x28] sm:$0xff]  ;;  %v94_v50 = vld [vmem:[#allocation3 + $0x30] sm:$0xff] }
  0x20   :  { %115 = vmatpush.xpose.msra.mxu0 %v108_v6  ;;  %v86_v33 = vld [vmem:[#allocation9] sm:$0xff]  ;;  %v95_v51 = vld [vmem:[#allocation3 + $0x38] sm:$0xff] }
  0x21   :  { %193 = vmatpush.xpose.msra.mxu1 %v635_v7  ;;  %217 = vmatpush.xpose.msra.mxu2 %v635_v7  ;;  %v784_v35 = vld [vmem:[%s803_s3] ss:$0 sm:$0xff]  ;;  %s569_s3 = smov [#allocation11]  }
  0x22   :  { %242 = vmatpush.xpose.msra.mxu3 %v635_v7  ;;  %v92_v43 = vld [vmem:[#allocation3 + $0x20] sm:$0xff]  ;;  %s394_s13 = sshll.u32 %s569_s3, 4  ;;  %s395_s13 = int_to_ptr.vmem [resolvable:$true] %s394_s13 }
  0x24   :  { %116 = vmatpush.xpose.msra.mxu0 %v107_v8 }
  0x25   :  { %194 = vmatpush.xpose.msra.mxu1 %v640_v9  ;;  %218 = vmatpush.xpose.msra.mxu2 %v640_v9 }
  0x26   :  { %243 = vmatpush.xpose.msra.mxu3 %v640_v9 }
  0x28   :  { %117 = vmatpush.xpose.msra.mxu0 %v106_v10 }
  0x29   :  { %195 = vmatpush.xpose.msra.mxu1 %v645_v11  ;;  %219 = vmatpush.xpose.msra.mxu2 %v645_v11 }
  0x2a   :  { %244 = vmatpush.xpose.msra.mxu3 %v645_v11 }
  0x2c   :  { %118 = vmatpush.xpose.msra.mxu0 %v105_v12 }
  0x2d   :  { %196 = vmatpush.xpose.msra.mxu1 %v650_v13  ;;  %220 = vmatpush.xpose.msra.mxu2 %v650_v13 }
  0x2e   :  { %245 = vmatpush.xpose.msra.mxu3 %v650_v13 }
  0x30   :  { %119 = vmatpush.xpose.msra.mxu0 %v104_v14 }
  0x31   :  { %197 = vmatpush.xpose.msra.mxu1 %v655_v15  ;;  %221 = vmatpush.xpose.msra.mxu2 %v655_v15 }
  0x32   :  { %246 = vmatpush.xpose.msra.mxu3 %v655_v15 }
  0x34   :  { %120 = vmatpush.xpose.msra.mxu0 %v103_v16 }
  0x35   :  { %198 = vmatpush.xpose.msra.mxu1 %v660_v17  ;;  %222 = vmatpush.xpose.msra.mxu2 %v660_v17 }
  0x36   :  { %247 = vmatpush.xpose.msra.mxu3 %v660_v17 }
  0x38   :  { %121 = vmatpush.xpose.msra.mxu0 %v102_v18 }
  0x39   :  { %199 = vmatpush.xpose.msra.mxu1 %v665_v19  ;;  %223 = vmatpush.xpose.msra.mxu2 %v665_v19 }
  0x3a   :  { %248 = vmatpush.xpose.msra.mxu3 %v665_v19 }
  0x3c   :  { %122 = vmatpush.xpose.msra.mxu0 %v101_v20 }
  0x3d   :  { %200 = vmatpush.xpose.msra.mxu1 %v670_v21  ;;  %224 = vmatpush.xpose.msra.mxu2 %v670_v21 }
  0x3e   :  { %249 = vmatpush.xpose.msra.mxu3 %v670_v21 }
  0x40   :  { %123 = vmatpush.xpose.msra.mxu0 %v100_v22 }
  0x41   :  { %201 = vmatpush.xpose.msra.mxu1 %v675_v23  ;;  %225 = vmatpush.xpose.msra.mxu2 %v675_v23 }
  0x42   :  { %250 = vmatpush.xpose.msra.mxu3 %v675_v23 }
  0x44   :  { %124 = vmatpush.xpose.msra.mxu0 %v99_v24 }
  0x45   :  { %202 = vmatpush.xpose.msra.mxu1 %v680_v25  ;;  %226 = vmatpush.xpose.msra.mxu2 %v680_v25 }
  0x46   :  { %251 = vmatpush.xpose.msra.mxu3 %v680_v25 }
  0x48   :  { %125 = vmatpush.xpose.msra.mxu0 %v98_v26 }
  0x49   :  { %203 = vmatpush.xpose.msra.mxu1 %v685_v27  ;;  %227 = vmatpush.xpose.msra.mxu2 %v685_v27 }
  0x4a   :  { %252 = vmatpush.xpose.msra.mxu3 %v685_v27 }
  0x4c   :  { %126 = vmatpush.xpose.msra.mxu0 %v97_v28 }
  0x4d   :  { %204 = vmatpush.xpose.msra.mxu1 %v690_v29  ;;  %228 = vmatpush.xpose.msra.mxu2 %v690_v29 }
  0x4e   :  { %253 = vmatpush.xpose.msra.mxu3 %v690_v29 }
  0x50   :  { %127 = vmatpush.xpose.msra.mxu0 %v96_v30 }
  0x51   :  { %205 = vmatpush.xpose.msra.mxu1 %v695_v31  ;;  %229 = vmatpush.xpose.msra.mxu2 %v695_v31 }
  0x52   :  { %254 = vmatpush.xpose.msra.mxu3 %v695_v31 }
  0x53   :  { %128 = vmatmul.f32.vlgmr.msra.gmra.mxu0 %v88_v32 }
  0x54   :  { %264 = vmatpush.xpose.msrb.mxu0 %v621_v1  ;;  %206 = vmatmul.f32.vlgmr.msra.gmra.mxu1 %v86_v33 }
  0x55   :  { %289 = vmatpush.xpose.msrb.mxu1 %v621_v1  ;;  %314 = vmatpush.xpose.msrb.mxu2 %v621_v1 }
  0x56   :  { %339 = vmatpush.xpose.msrb.mxu3 %v621_v1 }
  0x58   :  { %265 = vmatpush.xpose.msrb.mxu0 %v625_v3 }
  0x59   :  { %290 = vmatpush.xpose.msrb.mxu1 %v625_v3  ;;  %315 = vmatpush.xpose.msrb.mxu2 %v625_v3 }
  0x5a   :  { %340 = vmatpush.xpose.msrb.mxu3 %v625_v3 }
  0x5b   :  { %131 = vmatmul.f32.gmra.mxu0 %v89_v34 }
  0x5c   :  { %266 = vmatpush.xpose.msrb.mxu0 %v630_v5 }
  0x5d   :  { %291 = vmatpush.xpose.msrb.mxu1 %v630_v5  ;;  %316 = vmatpush.xpose.msrb.mxu2 %v630_v5 }
  0x5e   :  { %341 = vmatpush.xpose.msrb.mxu3 %v630_v5 }
  0x60   :  { %267 = vmatpush.xpose.msrb.mxu0 %v635_v7 }
  0x61   :  { %292 = vmatpush.xpose.msrb.mxu1 %v635_v7  ;;  %317 = vmatpush.xpose.msrb.mxu2 %v635_v7 }
  0x62   :  { %342 = vmatpush.xpose.msrb.mxu3 %v635_v7 }
  0x63   :  { %134 = vmatmul.f32.gmra.mxu0 %v90_v41 }
  0x64   :  { %268 = vmatpush.xpose.msrb.mxu0 %v640_v9 }
  0x65   :  { %293 = vmatpush.xpose.msrb.mxu1 %v640_v9  ;;  %318 = vmatpush.xpose.msrb.mxu2 %v640_v9 }
  0x66   :  { %343 = vmatpush.xpose.msrb.mxu3 %v640_v9 }
  0x68   :  { %269 = vmatpush.xpose.msrb.mxu0 %v645_v11 }
  0x69   :  { %294 = vmatpush.xpose.msrb.mxu1 %v645_v11  ;;  %319 = vmatpush.xpose.msrb.mxu2 %v645_v11 }
  0x6a   :  { %344 = vmatpush.xpose.msrb.mxu3 %v645_v11 }
  0x6b   :  { %137 = vmatmul.f32.gmra.mxu0 %v91_v42 }
  0x6c   :  { %270 = vmatpush.xpose.msrb.mxu0 %v650_v13 }
  0x6d   :  { %295 = vmatpush.xpose.msrb.mxu1 %v650_v13  ;;  %320 = vmatpush.xpose.msrb.mxu2 %v650_v13 }
  0x6e   :  { %345 = vmatpush.xpose.msrb.mxu3 %v650_v13 }
  0x70   :  { %271 = vmatpush.xpose.msrb.mxu0 %v655_v15 }
  0x71   :  { %296 = vmatpush.xpose.msrb.mxu1 %v655_v15  ;;  %321 = vmatpush.xpose.msrb.mxu2 %v655_v15 }
  0x72   :  { %346 = vmatpush.xpose.msrb.mxu3 %v655_v15 }
  0x73   :  { %140 = vmatmul.f32.gmra.mxu0 %v92_v43 }
  0x74   :  { %272 = vmatpush.xpose.msrb.mxu0 %v660_v17 }
  0x75   :  { %297 = vmatpush.xpose.msrb.mxu1 %v660_v17  ;;  %322 = vmatpush.xpose.msrb.mxu2 %v660_v17 }
  0x76   :  { %347 = vmatpush.xpose.msrb.mxu3 %v660_v17 }
  0x78   :  { %273 = vmatpush.xpose.msrb.mxu0 %v665_v19 }
  0x79   :  { %298 = vmatpush.xpose.msrb.mxu1 %v665_v19  ;;  %323 = vmatpush.xpose.msrb.mxu2 %v665_v19 }
  0x7a   :  { %348 = vmatpush.xpose.msrb.mxu3 %v665_v19 }
  0x7b   :  { %143 = vmatmul.f32.gmra.mxu0 %v93_v47 }
  0x7c   :  { %274 = vmatpush.xpose.msrb.mxu0 %v670_v21 }
  0x7d   :  { %299 = vmatpush.xpose.msrb.mxu1 %v670_v21  ;;  %324 = vmatpush.xpose.msrb.mxu2 %v670_v21 }
  0x7e   :  { %349 = vmatpush.xpose.msrb.mxu3 %v670_v21 }
  0x80   :  { %275 = vmatpush.xpose.msrb.mxu0 %v675_v23 }
  0x81   :  { %300 = vmatpush.xpose.msrb.mxu1 %v675_v23  ;;  %325 = vmatpush.xpose.msrb.mxu2 %v675_v23 }
  0x82   :  { %350 = vmatpush.xpose.msrb.mxu3 %v675_v23 }
  0x83   :  { %146 = vmatmul.f32.gmra.mxu0 %v94_v50 }
  0x84   :  { %276 = vmatpush.xpose.msrb.mxu0 %v680_v25 }
  0x85   :  { %301 = vmatpush.xpose.msrb.mxu1 %v680_v25  ;;  %326 = vmatpush.xpose.msrb.mxu2 %v680_v25 }
  0x86   :  { %351 = vmatpush.xpose.msrb.mxu3 %v680_v25 }
  0x88   :  { %277 = vmatpush.xpose.msrb.mxu0 %v685_v27 }
  0x89   :  { %302 = vmatpush.xpose.msrb.mxu1 %v685_v27  ;;  %327 = vmatpush.xpose.msrb.mxu2 %v685_v27 }
  0x8a   :  { %352 = vmatpush.xpose.msrb.mxu3 %v685_v27 }
  0x8b   :  { %149 = vmatmul.f32.gmra.mxu0 %v95_v51 }
  0x8c   :  { %278 = vmatpush.xpose.msrb.mxu0 %v690_v29 }
  0x8d   :  { %303 = vmatpush.xpose.msrb.mxu1 %v690_v29  ;;  %328 = vmatpush.xpose.msrb.mxu2 %v690_v29 }
  0x8e   :  { %353 = vmatpush.xpose.msrb.mxu3 %v690_v29 }
  0x90   :  { %279 = vmatpush.xpose.msrb.mxu0 %v695_v31 }
  0x91   :  { %304 = vmatpush.xpose.msrb.mxu1 %v695_v31  ;;  %329 = vmatpush.xpose.msrb.mxu2 %v695_v31 }
  0x92   :  { %354 = vmatpush.xpose.msrb.mxu3 %v695_v31 }
  0x94   :  { %364 = vmatpush.xpose.msra.mxu0 %v621_v1 }
  0x98   :  { %365 = vmatpush.xpose.msra.mxu0 %v625_v3 }
  0x9c   :  { %366 = vmatpush.xpose.msra.mxu0 %v630_v5 }
  0xa0   :  { %367 = vmatpush.xpose.msra.mxu0 %v635_v7 }
  0xa4   :  { %368 = vmatpush.xpose.msra.mxu0 %v640_v9 }
  0xa8   :  { %369 = vmatpush.xpose.msra.mxu0 %v645_v11 }
  0xac   :  { %370 = vmatpush.xpose.msra.mxu0 %v650_v13 }
  0xb0   :  { %371 = vmatpush.xpose.msra.mxu0 %v655_v15 }
  0xb4   :  { %372 = vmatpush.xpose.msra.mxu0 %v660_v17 }
  0xb8   :  { %373 = vmatpush.xpose.msra.mxu0 %v665_v19 }
  0xbc   :  { %374 = vmatpush.xpose.msra.mxu0 %v670_v21 }
  0xc0   :  { %375 = vmatpush.xpose.msra.mxu0 %v675_v23 }
  0xc4   :  { %376 = vmatpush.xpose.msra.mxu0 %v680_v25 }
  0xc8   :  { %377 = vmatpush.xpose.msra.mxu0 %v685_v27 }
  0xcc   :  { %378 = vmatpush.xpose.msra.mxu0 %v690_v29 }
  0xd0   :  { %379 = vmatpush.xpose.msra.mxu0 %v695_v31  ;;  %v129_v36 = vpop.f32.mrf.mxu0 }
  0xd1   :  { %v157_v37 = vadd.f32 %v784_v35, %v129_v36  ;;  %v207_v38 = vpop.f32.mrf.mxu1 }
  0xd3   :  { %v211_v39 = vadd.f32 %v207_v38, %v157_v37 }
  0xd5   :  { %419 = vtanh.f32 %v211_v39 }
  0xd8   :  { %v132_v44 = vpop.f32.mrf.mxu0 }
  0xd9   :  { %v158_v45 = vadd.f32 %v784_v35, %v132_v44 }
  0xdb   :  { %v420_v40 = vpop.eup %419 }
  0xdc   :  { %213 = vst [vmem:[#allocation11] sm:$0xff] %v420_v40  ;;  %230 = vmatmul.f32.vlgmr.msra.gmra.mxu2 %v420_v40 }
  0xe0   :  { %v135_v52 = vpop.f32.mrf.mxu0 }
  0xe1   :  { %v159_v53 = vadd.f32 %v784_v35, %v135_v52 }
  0xe8   :  { %v138_v57 = vpop.f32.mrf.mxu0 }
  0xe9   :  { %v160_v62 = vadd.f32 %v784_v35, %v138_v57 }
  0xf0   :  { %v141_v58 = vpop.f32.mrf.mxu0 }
  0xf1   :  { %v161_v2 = vadd.f32 %v784_v35, %v141_v58 }
  0xf8   :  { %v144_v59 = vpop.f32.mrf.mxu0 }
  0xf9   :  { %v162_v6 = vadd.f32 %v784_v35, %v144_v59 }
 0x100   :  { %v147_v60 = vpop.f32.mrf.mxu0 }
 0x101   :  { %v163_v10 = vadd.f32 %v784_v35, %v147_v60 }
 0x108   :  { %v150_v61 = vpop.f32.mrf.mxu0 }
 0x109   :  { %v164_v14 = vadd.f32 %v784_v35, %v150_v61 }
 0x15f   :  { %v231_v46 = vpop.f32.mrf.mxu2 }
 0x160   :  { %v236_v48 = vadd.f32 %v231_v46, %v158_v45 }
 0x162   :  { %421 = vtanh.f32 %v236_v48 }
 0x168   :  { %v422_v49 = vpop.eup %421 }
 0x169   :  { %238 = vst [vmem:[#allocation11 + $0x8] sm:$0xff] %v422_v49  ;;  %255 = vmatmul.f32.vlgmr.msra.gmra.mxu3 %v422_v49 }
 0x1ec   :  { %v256_v54 = vpop.f32.mrf.mxu3 }
 0x1ed   :  { %v261_v55 = vadd.f32 %v256_v54, %v159_v53 }
 0x1ef   :  { %423 = vtanh.f32 %v261_v55 }
 0x1f5   :  { %v424_v56 = vpop.eup %423 }
 0x1f6   :  { %263 = vst [vmem:[#allocation11 + $0x10] sm:$0xff] %v424_v56  ;;  %280 = vmatmul.f32.vlgmr.msrb.gmra.mxu0 %v424_v56 }
 0x273   :  { %v281_v63 = vpop.f32.mrf.mxu0 }
 0x274   :  { %v286_v0 = vadd.f32 %v281_v63, %v160_v62 }
 0x276   :  { %425 = vtanh.f32 %v286_v0 }
 0x27c   :  { %v426_v1 = vpop.eup %425 }
 0x27d   :  { %288 = vst [vmem:[#allocation11 + $0x18] sm:$0xff] %v426_v1  ;;  %305 = vmatmul.f32.vlgmr.msrb.gmra.mxu1 %v426_v1 }
 0x2fa   :  { %v306_v3 = vpop.f32.mrf.mxu1 }
 0x2fb   :  { %v311_v4 = vadd.f32 %v306_v3, %v161_v2 }
 0x2fd   :  { %427 = vtanh.f32 %v311_v4 }
 0x303   :  { %v428_v5 = vpop.eup %427 }
 0x304   :  { %313 = vst [vmem:[#allocation11 + $0x20] sm:$0xff] %v428_v5  ;;  %330 = vmatmul.f32.vlgmr.msrb.gmra.mxu2 %v428_v5 }
 0x387   :  { %v331_v7 = vpop.f32.mrf.mxu2 }
 0x388   :  { %v336_v8 = vadd.f32 %v331_v7, %v162_v6 }
 0x38a   :  { %429 = vtanh.f32 %v336_v8 }
 0x390   :  { %v430_v9 = vpop.eup %429 }
 0x391   :  { %338 = vst [vmem:[#allocation11 + $0x28] sm:$0xff] %v430_v9  ;;  %355 = vmatmul.f32.vlgmr.msrb.gmra.mxu3 %v430_v9 }
 0x414   :  { %v356_v11 = vpop.f32.mrf.mxu3 }
 0x415   :  { %v361_v12 = vadd.f32 %v356_v11, %v163_v10 }
 0x417   :  { %431 = vtanh.f32 %v361_v12 }
 0x41d   :  { %v432_v13 = vpop.eup %431 }
 0x41e   :  { %363 = vst [vmem:[#allocation11 + $0x30] sm:$0xff] %v432_v13  ;;  %380 = vmatmul.f32.vlgmr.msra.gmra.mxu0 %v432_v13 }
 0x49b   :  { %v381_v15 = vpop.f32.mrf.mxu0 }
 0x49c   :  { %v386_v16 = vadd.f32 %v381_v15, %v164_v14 }
 0x49e   :  { %433 = vtanh.f32 %v386_v16 }
 0x4a4   :  { %v434_v17 = vpop.eup %433 }
 0x4a5   :  { %388 = vst [vmem:[#allocation11 + $0x38] sm:$0xff] %v434_v17 }
 0x4a6   :  { %402 = dma.vmem_to_hbm [thread:$0]  %s395_s13, 1024, %s397_s16, [#allocation5], %s564_s26, %s564_s26, %s565_s27  }
 0x4a7   :  { %561 = dma.done.wait [#allocation5], 1024  }
 0x4a8   :  { %562 = vsyncadd [#allocation5], 4294966272 }
 0x4a9   :  { %407 = vsyncpa [#allocation4], 1 }
 0x4aa   :  { %408 = vsyncpa [#allocation7], 1 }
 0x4ab   :  { %409 = vsyncpa [#allocation10], 1 }
 0x4ac   :  { %410 = vsyncpa [#allocation5], 1 }

</bundles_post_ra>
